<compile_context>
chip_gen: v7x
topology: tpu7x:2x2x1
jax: 0.10.0
libtpu: 0.0.40
codegen_flags: <defaults>
</compile_context>

<pallas_src>
import math
import jax
import jax.numpy as jnp
from jax.experimental import pallas as pl
from jax.experimental.pallas import tpu as pltpu


# ----------------------------- kernels ------------------------------------


def _mlp_head(s, a, w1s_ref, w1a_ref, b1_ref, w2_ref, b2_ref, w3_ref, b3_ref,
              out_dtype):
    """One 3-layer Q head.  s/a are loaded activation tiles; weights are refs."""
    cd = w1s_ref.dtype
    # Layer 1: concat(state, action) @ W1 == state @ W1[:S] + action @ W1[S:]
    h1 = (jnp.dot(s.astype(cd), w1s_ref[...], preferred_element_type=jnp.float32)
          + jnp.dot(a.astype(cd), w1a_ref[...], preferred_element_type=jnp.float32)
          + b1_ref[...])
    h1 = jnp.maximum(h1, 0.0)                                   # ReLU in f32
    # Layer 2
    h2 = jnp.dot(h1.astype(w2_ref.dtype), w2_ref[...],
                 preferred_element_type=jnp.float32) + b2_ref[...]
    h2 = jnp.maximum(h2, 0.0)
    # Layer 3 (no activation)
    y3 = jnp.dot(h2.astype(w3_ref.dtype), w3_ref[...],
                 preferred_element_type=jnp.float32) + b3_ref[...]
    return y3.astype(out_dtype)


def _q_single_kernel(s_ref, a_ref, w1s, w1a, b1, w2, b2, w3, b3, o_ref):
    o_ref[...] = _mlp_head(s_ref[...], a_ref[...],
                           w1s, w1a, b1, w2, b2, w3, b3, o_ref.dtype)


def _q_twin_kernel(s_ref, a_ref,
                   w1s1, w1a1, b11, w21, b21, w31, b31,
                   w1s2, w1a2, b12, w22, b22, w32, b32,
                   o1_ref, o2_ref):
    s = s_ref[...]
    a = a_ref[...]
    o1_ref[...] = _mlp_head(s, a, w1s1, w1a1, b11, w21, b21, w31, b31, o1_ref.dtype)
    o2_ref[...] = _mlp_head(s, a, w1s2, w1a2, b12, w22, b22, w32, b32, o2_ref.dtype)


# --------------------------- wrapper helpers --------------------------------


def prepare_params(params, state_dim, compute_dtype=jnp.bfloat16):
    """Hoisted, call-once preprocessing: split W1 at the concat boundary and
    (optionally) cast the MXU inputs to a low-precision dtype.  Biases stay
    f32 (bias-add / ReLU / accumulation are f32 inside the kernel)."""
    w1, b1, w2, b2, w3, b3 = params
    w1s, w1a = w1[:state_dim], w1[state_dim:]
    if compute_dtype is not None:
        w1s = w1s.astype(compute_dtype)
        w1a = w1a.astype(compute_dtype)
        w2 = w2.astype(compute_dtype)
        w3 = w3.astype(compute_dtype)
    b1 = b1.astype(jnp.float32)
    b2 = b2.astype(jnp.float32)
    b3 = b3.astype(jnp.float32)
    return (w1s, w1a, b1, w2, b2, w3, b3)


def _resident_specs(arrays):
    """Whole-array, grid-invariant BlockSpecs (weights stay resident in VMEM)."""
    specs = []
    for arr in arrays:
        n = arr.ndim
        specs.append(pl.BlockSpec(arr.shape, lambda i, _n=n: (0,) * _n))
    return specs


def _lane_pad(d):
    return ((d + 127) // 128) * 128


def _pick_tile(B, sub, per_row_bytes, vmem_budget_bytes, batch_block):
    """Largest batch tile that (a) fits the VMEM budget (double-buffered),
    (b) respects an optional user cap, (c) leaves >=2 grid steps so the
    'parallel' batch axis shards across both TensorCores on v7x."""
    cap = max(sub, (vmem_budget_bytes // per_row_bytes) // sub * sub)
    if batch_block is not None:
        cap = min(cap, max(sub, (batch_block // sub) * sub))
    tb = min(B, cap)
    if B > sub:
        half = ((pl.cdiv(B, 2) + sub - 1) // sub) * sub   # ceil(B/2) rounded up
        tb = min(tb, half)
    return max(1, tb)


_VMEM_LIMIT = 32 * 1024 * 1024   # raise v5e's 16 MiB default; <= v7x physical


# ------------------------------ forwards ------------------------------------


def soft_q_forward(state, action, prepared, *, batch_block=None,
                   vmem_budget_bytes=12 << 20):
    """Pallas implementation of Soft_Q_Network.forward(state, action).

    `prepared` comes from prepare_params(params, state_dim, compute_dtype)."""
    B, state_dim = state.shape
    _, action_dim = action.shape
    w1s, w1a, b1, w2, b2, w3, b3 = prepared
    assert w1s.shape[0] == state_dim and w1a.shape[0] == action_dim
    H = w1s.shape[1]
    D_out = w3.shape[1]
    D_in = state_dim + action_dim

    itemsize = jnp.dtype(state.dtype).itemsize
    sub = 8 if itemsize >= 4 else (16 if itemsize == 2 else 32)

    # Double-buffered VMEM bytes per batch row (lane-padded to 128).
    per_row = (2 * _lane_pad(state_dim) * itemsize
               + 2 * _lane_pad(action_dim) * itemsize
               + 2 * _lane_pad(D_out) * 4)
    tb = _pick_tile(B, sub, per_row, vmem_budget_bytes, batch_block)
    grid = (pl.cdiv(B, tb),)

    w_item = jnp.dtype(w1s.dtype).itemsize
    flops = 2 * B * (D_in * H + H * H + H * D_out)
    bytes_accessed = (B * D_in * itemsize                        # activations in
                      + (D_in * H + H * H + H * D_out) * w_item  # weights (once)
                      + (2 * H + D_out) * 4                      # biases
                      + B * D_out * 4)                           # compact output

    return pl.pallas_call(
        _q_single_kernel,
        out_shape=jax.ShapeDtypeStruct((B, D_out), jnp.float32),
        grid_spec=pltpu.PrefetchScalarGridSpec(
            num_scalar_prefetch=0,
            grid=grid,
            in_specs=[
                pl.BlockSpec((tb, state_dim), lambda i: (i, 0)),    # state tile
                pl.BlockSpec((tb, action_dim), lambda i: (i, 0)),   # action tile
                *_resident_specs(prepared),                          # weights/biases
            ],
            out_specs=pl.BlockSpec((tb, D_out), lambda i: (i, 0)),
        ),
        compiler_params=pltpu.CompilerParams(
            dimension_semantics=("parallel",),
            vmem_limit_bytes=_VMEM_LIMIT,
        ),
        cost_estimate=pl.CostEstimate(
            flops=flops, transcendentals=0, bytes_accessed=bytes_accessed),
    )(state, action, *prepared)


def soft_q_forward_twin(state, action, prepared1, prepared2, *, batch_block=None,
                        vmem_budget_bytes=12 << 20):
    """Twin-critic fusion: Q1(state, action), Q2(state, action) from one
    pallas_call — the state/action tiles are read from HBM once."""
    B, state_dim = state.shape
    _, action_dim = action.shape
    H = prepared1[0].shape[1]
    D1 = prepared1[5].shape[1]
    D2 = prepared2[5].shape[1]
    D_in = state_dim + action_dim

    itemsize = jnp.dtype(state.dtype).itemsize
    sub = 8 if itemsize >= 4 else (16 if itemsize == 2 else 32)

    per_row = (2 * _lane_pad(state_dim) * itemsize
               + 2 * _lane_pad(action_dim) * itemsize
               + 2 * _lane_pad(D1) * 4
               + 2 * _lane_pad(D2) * 4)
    tb = _pick_tile(B, sub, per_row, vmem_budget_bytes, batch_block)
    grid = (pl.cdiv(B, tb),)

    w_item = jnp.dtype(prepared1[0].dtype).itemsize
    flops = 2 * B * (D_in * H + H * H + H * D1) + 2 * B * (D_in * H + H * H + H * D2)
    bytes_accessed = (B * D_in * itemsize
                      + (2 * (D_in * H + H * H) + H * (D1 + D2)) * w_item
                      + (4 * H + D1 + D2) * 4
                      + B * (D1 + D2) * 4)

    return pl.pallas_call(
        _q_twin_kernel,
        out_shape=(jax.ShapeDtypeStruct((B, D1), jnp.float32),
                   jax.ShapeDtypeStruct((B, D2), jnp.float32)),
        grid_spec=pltpu.PrefetchScalarGridSpec(
            num_scalar_prefetch=0,
            grid=grid,
            in_specs=[
                pl.BlockSpec((tb, state_dim), lambda i: (i, 0)),
                pl.BlockSpec((tb, action_dim), lambda i: (i, 0)),
                *_resident_specs(prepared1),
                *_resident_specs(prepared2),
            ],
            out_specs=(pl.BlockSpec((tb, D1), lambda i: (i, 0)),
                       pl.BlockSpec((tb, D2), lambda i: (i, 0))),
        ),
        compiler_params=pltpu.CompilerParams(
            dimension_semantics=("parallel",),
            vmem_limit_bytes=_VMEM_LIMIT,
        ),
        cost_estimate=pl.CostEstimate(
            flops=flops, transcendentals=0, bytes_accessed=bytes_accessed),
    )(state, action, *prepared1, *prepared2)


# --------------------------- init / reference -------------------------------


def init_params(key, input_size, hidden_size, output_size):
    """nn.Linear default init: U(-1/sqrt(fan_in), 1/sqrt(fan_in)).
    Weights are stored pre-transposed as (in, out)."""
    ks = jax.random.split(key, 6)

    def linear(kw, kb, fan_in, fan_out):
        bound = 1.0 / math.sqrt(fan_in)
        w = jax.random.uniform(kw, (fan_in, fan_out), jnp.float32, -bound, bound)
        b = jax.random.uniform(kb, (1, fan_out), jnp.float32, -bound, bound)
        return w, b

    w1, b1 = linear(ks[0], ks[1], input_size, hidden_size)
    w2, b2 = linear(ks[2], ks[3], hidden_size, hidden_size)
    w3, b3 = linear(ks[4], ks[5], hidden_size, output_size)
    return (w1, b1, w2, b2, w3, b3)


def soft_q_reference(state, action, params):
    """Pure-JAX reference for correctness checking."""
    w1, b1, w2, b2, w3, b3 = params
    x = jnp.concatenate([state, action], axis=1)
    y1 = jnp.maximum(x @ w1 + b1, 0.0)
    y2 = jnp.maximum(y1 @ w2 + b2, 0.0)
    return y2 @ w3 + b3


# --------------------------------- main --------------------------------------


if __name__ == "__main__":
    batch = 8
    state_dim = 24
    action_dim = 8
    input_size = state_dim + action_dim   # 32
    hidden_size = 32
    output_size = 8

    key = jax.random.PRNGKey(0)
    k_s, k_a, k_p, k_p2 = jax.random.split(key, 4)
    state = jax.random.normal(k_s, (batch, state_dim), jnp.float32)
    action = jax.random.normal(k_a, (batch, action_dim), jnp.float32)
    params = init_params(k_p, input_size, hidden_size, output_size)
    params2 = init_params(k_p2, input_size, hidden_size, output_size)

    ref = soft_q_reference(state, action, params)

    # Hoisted (call-once) weight preprocessing.
    prep_f32 = prepare_params(params, state_dim, compute_dtype=None)
    prep_bf16 = prepare_params(params, state_dim, compute_dtype=jnp.bfloat16)
    prep2_bf16 = prepare_params(params2, state_dim, compute_dtype=jnp.bfloat16)

    # 1) Exact-precision path (f32 MXU inputs): tight match to reference.
    out_f32 = jax.block_until_ready(soft_q_forward(state, action, prep_f32))
    assert out_f32.shape == (batch, output_size)
    assert jnp.allclose(out_f32, ref, atol=1e-5, rtol=1e-5), "f32 mismatch vs reference"

    # 2) Fast path (bf16 MXU inputs, f32 accumulate / bias / ReLU).
    out_bf16 = jax.block_until_ready(soft_q_forward(state, action, prep_bf16))
    assert out_bf16.shape == (batch, output_size)
    assert jnp.allclose(out_bf16, ref, atol=5e-2, rtol=5e-2), "bf16 mismatch vs reference"

    # 3) Partial-tile + multi-step grid check (batch not divisible by tile).
    b2_ = 12
    k_s2, k_a2 = jax.random.split(jax.random.PRNGKey(1), 2)
    state2 = jax.random.normal(k_s2, (b2_, state_dim), jnp.float32)
    action2 = jax.random.normal(k_a2, (b2_, action_dim), jnp.float32)
    out2 = jax.block_until_ready(
        soft_q_forward(state2, action2, prep_f32, batch_block=8))
    ref2 = soft_q_reference(state2, action2, params)
    assert out2.shape == (b2_, output_size)
    assert jnp.allclose(out2, ref2, atol=1e-5, rtol=1e-5), "partial-tile mismatch"

    # 4) Fused twin critics (single pallas_call, shared activation reads).
    q1, q2 = jax.block_until_ready(
        soft_q_forward_twin(state, action, prep_bf16, prep2_bf16))
    ref_q2 = soft_q_reference(state, action, params2)
    assert q1.shape == (batch, output_size) and q2.shape == (batch, output_size)
    assert jnp.allclose(q1, ref, atol=5e-2, rtol=5e-2), "twin Q1 mismatch"
    assert jnp.allclose(q2, ref_q2, atol=5e-2, rtol=5e-2), "twin Q2 mismatch"

    print("KERNEL_OK")
</pallas_src>

<mosaic_0001>
module attributes {stable_mosaic.version = 11 : i64} {
  func.func @_q_single_kernel(%arg0: i32, %arg1: memref<8x24xf32, #tpu.memory_space<vmem>>, %arg2: memref<8x8xf32, #tpu.memory_space<vmem>>, %arg3: memref<24x32xf32, #tpu.memory_space<vmem>>, %arg4: memref<8x32xf32, #tpu.memory_space<vmem>>, %arg5: memref<1x32xf32, #tpu.memory_space<vmem>>, %arg6: memref<32x32xf32, #tpu.memory_space<vmem>>, %arg7: memref<1x32xf32, #tpu.memory_space<vmem>>, %arg8: memref<32x8xf32, #tpu.memory_space<vmem>>, %arg9: memref<1x8xf32, #tpu.memory_space<vmem>>, %arg10: memref<8x8xf32, #tpu.memory_space<vmem>>) attributes {dimension_semantics = [#tpu.dimension_semantics<parallel>], iteration_bounds = array<i64: 1>, scalar_prefetch = 0 : i64, scratch_operands = 0 : i64, tpu.core_type = #tpu.core_type<tc>, window_params = [{transform_indices = @transform_0, window_bounds = array<i64: 8, 24>}, {transform_indices = @transform_1, window_bounds = array<i64: 8, 8>}, {pipeline_mode = #tpu.pipeline_mode<synchronous>, transform_indices = @transform_2, window_bounds = array<i64: 24, 32>}, {pipeline_mode = #tpu.pipeline_mode<synchronous>, transform_indices = @transform_3, window_bounds = array<i64: 8, 32>}, {pipeline_mode = #tpu.pipeline_mode<synchronous>, transform_indices = @transform_4, window_bounds = array<i64: 1, 32>}, {pipeline_mode = #tpu.pipeline_mode<synchronous>, transform_indices = @transform_5, window_bounds = array<i64: 32, 32>}, {pipeline_mode = #tpu.pipeline_mode<synchronous>, transform_indices = @transform_6, window_bounds = array<i64: 1, 32>}, {pipeline_mode = #tpu.pipeline_mode<synchronous>, transform_indices = @transform_7, window_bounds = array<i64: 32, 8>}, {pipeline_mode = #tpu.pipeline_mode<synchronous>, transform_indices = @transform_8, window_bounds = array<i64: 1, 8>}, {transform_indices = @transform_9, window_bounds = array<i64: 8, 8>}]} {
    %c0 = arith.constant 0 : index
    %c0_0 = arith.constant 0 : index
    %0 = vector.load %arg1[%c0, %c0_0] : memref<8x24xf32, #tpu.memory_space<vmem>>, vector<8x24xf32>
    %c0_1 = arith.constant 0 : index
    %c0_2 = arith.constant 0 : index
    %1 = vector.load %arg2[%c0_1, %c0_2] : memref<8x8xf32, #tpu.memory_space<vmem>>, vector<8x8xf32>
    %c0_3 = arith.constant 0 : index
    %c0_4 = arith.constant 0 : index
    %2 = vector.load %arg3[%c0_3, %c0_4] : memref<24x32xf32, #tpu.memory_space<vmem>>, vector<24x32xf32>
    %cst = arith.constant dense<0.000000e+00> : vector<8x32xf32>
    %3 = tpu.matmul %0, %2, %cst {dimension_numbers = #tpu.dot_dimension_numbers<[1], [0], [0], [1], [0, 0, 1, 1], [], []>} : vector<8x24xf32>, vector<24x32xf32>, vector<8x32xf32> -> vector<8x32xf32>
    %c0_5 = arith.constant 0 : index
    %c0_6 = arith.constant 0 : index
    %4 = vector.load %arg4[%c0_5, %c0_6] : memref<8x32xf32, #tpu.memory_space<vmem>>, vector<8x32xf32>
    %cst_7 = arith.constant dense<0.000000e+00> : vector<8x32xf32>
    %5 = tpu.matmul %1, %4, %cst_7 {dimension_numbers = #tpu.dot_dimension_numbers<[1], [0], [0], [1], [0, 0, 1, 1], [], []>} : vector<8x8xf32>, vector<8x32xf32>, vector<8x32xf32> -> vector<8x32xf32>
    %6 = arith.addf %3, %5 : vector<8x32xf32>
    %c0_8 = arith.constant 0 : index
    %c0_9 = arith.constant 0 : index
    %7 = vector.load %arg5[%c0_8, %c0_9] : memref<1x32xf32, #tpu.memory_space<vmem>>, vector<1x32xf32>
    %8 = vector.broadcast %7 : vector<1x32xf32> to vector<8x32xf32>
    %9 = arith.addf %6, %8 : vector<8x32xf32>
    %cst_10 = arith.constant 0.000000e+00 : f32
    %10 = vector.broadcast %cst_10 : f32 to vector<8x32xf32>
    %11 = arith.maximumf %9, %10 : vector<8x32xf32>
    %c0_11 = arith.constant 0 : index
    %c0_12 = arith.constant 0 : index
    %12 = vector.load %arg6[%c0_11, %c0_12] : memref<32x32xf32, #tpu.memory_space<vmem>>, vector<32x32xf32>
    %cst_13 = arith.constant dense<0.000000e+00> : vector<8x32xf32>
    %13 = tpu.matmul %11, %12, %cst_13 {dimension_numbers = #tpu.dot_dimension_numbers<[1], [0], [0], [1], [0, 0, 1, 1], [], []>} : vector<8x32xf32>, vector<32x32xf32>, vector<8x32xf32> -> vector<8x32xf32>
    %c0_14 = arith.constant 0 : index
    %c0_15 = arith.constant 0 : index
    %14 = vector.load %arg7[%c0_14, %c0_15] : memref<1x32xf32, #tpu.memory_space<vmem>>, vector<1x32xf32>
    %15 = vector.broadcast %14 : vector<1x32xf32> to vector<8x32xf32>
    %16 = arith.addf %13, %15 : vector<8x32xf32>
    %cst_16 = arith.constant 0.000000e+00 : f32
    %17 = vector.broadcast %cst_16 : f32 to vector<8x32xf32>
    %18 = arith.maximumf %16, %17 : vector<8x32xf32>
    %c0_17 = arith.constant 0 : index
    %c0_18 = arith.constant 0 : index
    %19 = vector.load %arg8[%c0_17, %c0_18] : memref<32x8xf32, #tpu.memory_space<vmem>>, vector<32x8xf32>
    %cst_19 = arith.constant dense<0.000000e+00> : vector<8x8xf32>
    %20 = tpu.matmul %18, %19, %cst_19 {dimension_numbers = #tpu.dot_dimension_numbers<[1], [0], [0], [1], [0, 0, 1, 1], [], []>} : vector<8x32xf32>, vector<32x8xf32>, vector<8x8xf32> -> vector<8x8xf32>
    %c0_20 = arith.constant 0 : index
    %c0_21 = arith.constant 0 : index
    %21 = vector.load %arg9[%c0_20, %c0_21] : memref<1x8xf32, #tpu.memory_space<vmem>>, vector<1x8xf32>
    %22 = vector.broadcast %21 : vector<1x8xf32> to vector<8x8xf32>
    %23 = arith.addf %20, %22 : vector<8x8xf32>
    %c0_22 = arith.constant 0 : index
    %c0_23 = arith.constant 0 : index
    %24 = vector.load %arg10[%c0_22, %c0_23] : memref<8x8xf32, #tpu.memory_space<vmem>>, vector<8x8xf32>
    tpu.vector_store %arg10[%c0_22, %c0_23], %23 {strides = array<i32>} : memref<8x8xf32, #tpu.memory_space<vmem>>, vector<8x8xf32>,
    return
  }
  func.func @transform_0(%arg0: i32) -> (i32, i32) {
    %c0_i32 = arith.constant 0 : i32
    %c0_i32_0 = arith.constant 0 : i32
    return %arg0, %c0_i32 : i32, i32
  }
  func.func @transform_1(%arg0: i32) -> (i32, i32) {
    %c0_i32 = arith.constant 0 : i32
    %c0_i32_0 = arith.constant 0 : i32
    return %arg0, %c0_i32 : i32, i32
  }
  func.func @transform_2(%arg0: i32) -> (i32, i32) {
    %c0_i32 = arith.constant 0 : i32
    %c0_i32_0 = arith.constant 0 : i32
    %c0_i32_1 = arith.constant 0 : i32
    return %c0_i32, %c0_i32_0 : i32, i32
  }
  func.func @transform_3(%arg0: i32) -> (i32, i32) {
    %c0_i32 = arith.constant 0 : i32
    %c0_i32_0 = arith.constant 0 : i32
    %c0_i32_1 = arith.constant 0 : i32
    return %c0_i32, %c0_i32_0 : i32, i32
  }
  func.func @transform_4(%arg0: i32) -> (i32, i32) {
    %c0_i32 = arith.constant 0 : i32
    %c0_i32_0 = arith.constant 0 : i32
    %c0_i32_1 = arith.constant 0 : i32
    return %c0_i32, %c0_i32_0 : i32, i32
  }
  func.func @transform_5(%arg0: i32) -> (i32, i32) {
    %c0_i32 = arith.constant 0 : i32
    %c0_i32_0 = arith.constant 0 : i32
    %c0_i32_1 = arith.constant 0 : i32
    return %c0_i32, %c0_i32_0 : i32, i32
  }
  func.func @transform_6(%arg0: i32) -> (i32, i32) {
    %c0_i32 = arith.constant 0 : i32
    %c0_i32_0 = arith.constant 0 : i32
    %c0_i32_1 = arith.constant 0 : i32
    return %c0_i32, %c0_i32_0 : i32, i32
  }
  func.func @transform_7(%arg0: i32) -> (i32, i32) {
    %c0_i32 = arith.constant 0 : i32
    %c0_i32_0 = arith.constant 0 : i32
    %c0_i32_1 = arith.constant 0 : i32
    return %c0_i32, %c0_i32_0 : i32, i32
  }
  func.func @transform_8(%arg0: i32) -> (i32, i32) {
    %c0_i32 = arith.constant 0 : i32
    %c0_i32_0 = arith.constant 0 : i32
    %c0_i32_1 = arith.constant 0 : i32
    return %c0_i32, %c0_i32_0 : i32, i32
  }
  func.func @transform_9(%arg0: i32) -> (i32, i32) {
    %c0_i32 = arith.constant 0 : i32
    %c0_i32_0 = arith.constant 0 : i32
    return %arg0, %c0_i32 : i32, i32
  }
}

</mosaic_0001>

<bundles_post_ra>
// kernel: tpu_custom_call.1
= control target key start
LH: loop header
LB: loop body
LE: loop exit
PB: predicated region body
PF: predicated region fallthrough
CT: control target
= control target key end

     0   :  { %14 = vsyncpa [#allocation3], 0  ;;  %s746_s0 = inlined_call_operand.hbm [shape: f32[8,24], index: 0, kind: input, shape index: {}]   ;;  %s747_s1 = inlined_call_operand.hbm [shape: f32[8,8], index: 1, kind: input, shape index: {}]   ;;  %s748_s2 = inlined_call_operand.vmem [shape: f32[24,32], index: 2, kind: input, shape index: {}]   ;;  %s749_s3 = inlined_call_operand.hbm [shape: f32[8,32], index: 3, kind: input, shape index: {}]   ;;  %s750_s4 = inlined_call_operand.vmem [shape: f32[1,32], index: 4, kind: input, shape index: {}]   ;;  %s751_s5 = inlined_call_operand.vmem [shape: f32[32,32], index: 5, kind: input, shape index: {}]   ;;  %s752_s6 = inlined_call_operand.vmem [shape: f32[1,32], index: 6, kind: input, shape index: {}]   ;;  %s753_s7 = inlined_call_operand.vmem [shape: f32[32,8], index: 7, kind: input, shape index: {}]   ;;  %s754_s8 = inlined_call_operand.vmem [shape: f32[1,8], index: 8, kind: input, shape index: {}]   ;;  %s755_s9 = inlined_call_operand.hbm [shape: f32[8,8], index: 9, kind: output, shape index: {}]  }
   0x1   :  { %15 = vsyncpa [#allocation6], 0 }
   0x2   :  { %16 = vsyncpa [#allocation4], 0  ;;  %s593_s30 = smov [#allocation5]   ;;  %s594_s11 = smov [#allocation2]  }
   0x3   :  { %s33_s10 = sshll.u32 %s593_s30, 4  ;;  %s23_s12 = sshll.u32 %s594_s11, 4  ;;  %s34_s10 = int_to_ptr.vmem [resolvable:$true] %s33_s10  ;;  %s24_s12 = int_to_ptr.vmem [resolvable:$true] %s23_s12 }
   0x4   :  { %s499_s15 = scalar_lea.hbm %s747_s1, 128 }
   0x5   :  { %p500_p0 = scmp.ne.s32.totalorder %s747_s1, %s499_s15  ;;  %p503_p1 = scmp.lt.u32.totalorder %s499_s15, %s747_s1 }
   0x7   :  { %p505_p2 = pnand %p503_p1, %p500_p0 }
   0x9   :  { %508 = shalt.err (!%p505_p2)
}
   0xa   :  { %s509_s20 = scalar_lea.vmem %s34_s10, 128  ;;  %p514_p4 = scmp.lt.s32.totalorder %s34_s10, %s34_s10 }
   0xb   :  { %p510_p3 = scmp.ne.s32.totalorder %s34_s10, %s509_s20  ;;  %p515_p5 = scmp.lt.s32.totalorder %s509_s20, %s509_s20 }
   0xd   :  { %p516_p6 = por %p515_p5, %p514_p4 }
   0xf   :  { %p517_p7 = pnand %p516_p6, %p510_p3 }
  0x11   :  { %520 = shalt.err (!%p517_p7)
}
  0x12   :  { %36 = dma.hbm_to_vmem [thread:$0]  %s747_s1, 128, %s34_s10, [#allocation6]  }
  0x13   :  { %s521_s25 = scalar_lea.hbm %s746_s0, 128 }
  0x14   :  { %p522_p8 = scmp.ne.s32.totalorder %s746_s0, %s521_s25  ;;  %p525_p9 = scmp.lt.u32.totalorder %s521_s25, %s746_s0 }
  0x16   :  { %p527_p10 = pnand %p525_p9, %p522_p8 }
  0x18   :  { %530 = shalt.err (!%p527_p10)
}
  0x19   :  { %s531_s30 = scalar_lea.vmem %s24_s12, 128  ;;  %p536_p12 = scmp.lt.s32.totalorder %s24_s12, %s24_s12 }
  0x1a   :  { %p532_p11 = scmp.ne.s32.totalorder %s24_s12, %s531_s30  ;;  %p537_p13 = scmp.lt.s32.totalorder %s531_s30, %s531_s30 }
  0x1c   :  { %p538_p0 = por %p537_p13, %p536_p12 }
  0x1e   :  { %p539_p1 = pnand %p538_p0, %p532_p11 }
  0x20   :  { %542 = shalt.err (!%p539_p1)
}
  0x21   :  { %26 = dma.hbm_to_vmem [thread:$0]  %s746_s0, 128, %s24_s12, [#allocation3]  }
  0x22   :  { %s595_s11 = smov [#allocation7]   ;;  %s543_s16 = scalar_lea.hbm %s749_s3, 128 }
  0x23   :  { %s45_s13 = sshll.u32 %s595_s11, 4  ;;  %p544_p2 = scmp.ne.s32.totalorder %s749_s3, %s543_s16  ;;  %s46_s13 = int_to_ptr.vmem [resolvable:$true] %s45_s13 }
  0x24   :  { %p547_p3 = scmp.lt.u32.totalorder %s543_s16, %s749_s3 }
  0x26   :  { %p549_p4 = pnand %p547_p3, %p544_p2 }
  0x28   :  { %552 = shalt.err (!%p549_p4)
}
  0x29   :  { %s553_s21 = scalar_lea.vmem %s46_s13, 128  ;;  %p558_p6 = scmp.lt.s32.totalorder %s46_s13, %s46_s13 }
  0x2a   :  { %p554_p5 = scmp.ne.s32.totalorder %s46_s13, %s553_s21  ;;  %p559_p7 = scmp.lt.s32.totalorder %s553_s21, %s553_s21 }
  0x2c   :  { %p560_p8 = por %p559_p7, %p558_p6 }
  0x2e   :  { %p561_p9 = pnand %p560_p8, %p554_p5 }
  0x30   :  { %564 = shalt.err (!%p561_p9)
}
  0x31   :  { %48 = dma.hbm_to_vmem [thread:$0]  %s749_s3, 128, %s46_s13, [#allocation6]  }
  0x32   :  { %587 = dma.done.wait [#allocation3], 128  }
  0x33   :  { %588 = vsyncadd [#allocation3], 4294967168 }
  0x34   :  { %589 = dma.done.wait [#allocation6], 256  }
  0x35   :  { %590 = vsyncadd [#allocation6], 4294967040  ;;  %v596_v0 = vmov 0.0|0.0   ;;  %v597_v1 = vmov 0.0   ;;  %vm598_vm0 = vmmov 0   ;;  %vm74_vm1 = vcmask 64512  }
  0x36   :  { %477 = vmatprep.subr.bf16.mxu1 %v596_v0  ;;  %441 = vmatprep.subr.mxu0 %v597_v1  ;;  %v70_v2 = vld [vmem:[%s748_s2] sm:$0xff]  ;;  %v71_v3 = vld [vmem:[%s748_s2 + $0x8] sm:$0xff]  ;;  %v73_v4 = vld [vmem:[#allocation7] sm:$0xff]  ;;  %vm148_vm2 = vcmask 195584   ;;  %vm242_vm3 = vcmask 261120   ;;  %s599_s23 = smov [#allocation8]  }
  0x37   :  { %443 = vmatprep.mubr.msk.f32.mxu0 %vm598_vm0, %v597_v1  ;;  %452 = vmatprep.mubr.msk.f32.mxu1 %vm598_vm0, %v597_v1  ;;  %v478_v5 = vpack.c.bf16 %v71_v3, %v70_v2  ;;  %v69_v6 = vld [vmem:[#allocation5] sm:$0xff]  ;;  %v72_v7 = vld [vmem:[%s748_s2 + $0x10] sm:$0xff]  ;;  %v68_v8 = vld [vmem:[#allocation2] sm:$0xff]  ;;  %s408_s24 = sshll.u32 %s599_s23, 4  ;;  %s409_s24 = int_to_ptr.vmem [resolvable:$true] %s408_s24 }
  0x38   :  { %442 = vmatpush3.msra.mxu0 %v73_v4  ;;  %v231_v9 = vld [vmem:[%s751_s5] sm:$0xff]  ;;  %v232_v10 = vld [vmem:[%s751_s5 + $0x8] sm:$0xff]  ;;  %v233_v12 = vld [vmem:[%s751_s5 + $0x10] sm:$0xff]  ;;  %p570_p11 = scmp.lt.s32.totalorder %s409_s24, %s409_s24 }
  0x39   :  { %444 = vmatmul.mubr.msk.f32.vlgmr.msra.gmra.mrb[0].mxu0 %vm74_vm1, %v69_v6  ;;  %480 = vmatprep.subr.bf16.mxu0 %v596_v0  ;;  %v481_v11 = vpack.c.bf16 %v232_v10, %v231_v9  ;;  %v234_v13 = vld [vmem:[%s751_s5 + $0x18] sm:$0xff]  ;;  %v317_v15 = vld [vmem:[%s753_s7] sm:$0xff]  ;;  %v318_v16 = vld [vmem:[%s753_s7 + $0x8] sm:$0xff] }
  0x3a   :  { %479 = vmatpush3.bf16.msra.mxu1 %v478_v5  ;;  %463 = vmatprep.mubr.msk.f32.mxu0 %vm598_vm0, %v597_v1  ;;  %v484_v14 = vpack.c.bf16 %v234_v13, %v233_v12  ;;  %v487_v17 = vpack.c.bf16 %v318_v16, %v317_v15  ;;  %v420_v21 = vld [vmem:[%s750_s4] ss:$0 sm:$0xff]  ;;  %v319_v26 = vld [vmem:[%s753_s7 + $0x10] sm:$0xff]  ;;  %v320_v27 = vld [vmem:[%s753_s7 + $0x18] sm:$0xff]  ;;  %s565_s7 = scalar_lea.vmem %s409_s24, 128 }
  0x3b   :  { %450 = vmatprep.subr.mxu1 %v597_v1  ;;  %482 = vmatpush3.bf16.msra.mxu0 %v481_v11  ;;  %v490_v28 = vpack.c.bf16 %v320_v27, %v319_v26  ;;  %v421_v29 = vld [vmem:[%s752_s6] ss:$0 sm:$0xff]  ;;  %p566_p10 = scmp.ne.s32.totalorder %s409_s24, %s565_s7  ;;  %p571_p12 = scmp.lt.s32.totalorder %s565_s7, %s565_s7 }
  0x3c   :  { %483 = vmatprep.subr.bf16.mxu0 %v596_v0  ;;  %v423_v34 = vld [vmem:[%s754_s8] ss:$0 sm:$0xff] }
  0x3d   :  { %p572_p13 = por %p571_p12, %p570_p11 }
  0x3e   :  { %451 = vmatpush3.msra.mxu1 %v72_v7 }
  0x3f   :  { %453 = vmatmul.mubr.msk.f32.vlgmr.msra.gmra.mrb[0].mxu1 %vm148_vm2, %v68_v8  ;;  %486 = vmatprep.subr.bf16.mxu1 %v596_v0  ;;  %p573_p0 = pnand %p572_p13, %p566_p10 }
  0x40   :  { %474 = vmatprep.mubr.msk.f32.mxu1 %vm598_vm0, %v597_v1  ;;  %485 = vmatpush3.bf16.msra.mxu0 %v484_v14 }
  0x41   :  { %488 = vmatpush3.bf16.msra.mxu1 %v487_v17 }
  0x42   :  { %489 = vmatprep.subr.bf16.mxu1 %v596_v0 }
  0x45   :  { %491 = vmatpush3.bf16.msra.mxu1 %v490_v28 }
 0x10c   :  { %v144_v18 = vpop.f32.mrb[0].mxu0 }
 0x10d   :  { %v445_v19 = vpop.f32.mrb[1].mxu0 }
 0x112   :  { %v218_v20 = vpop.f32.mrb[0].mxu1 }
 0x113   :  { %v219_v22 = vadd.f32 %v218_v20, %v144_v18  ;;  %v454_v23 = vpop.f32.mrb[1].mxu1 }
 0x115   :  { %v229_v24 = vadd.f32 %v420_v21, %v219_v22 }
 0x117   :  { %v230_v25 = vmax.f32 %v229_v24, 0.0 }
 0x119   :  { %464 = vmatmul.mubr.msk.f32.vlgmr.msra.gmra.mrb[2].mxu0 %vm242_vm3, %v230_v25 }
 0x1ec   :  { %v312_v30 = vpop.f32.mrb[2].mxu0 }
 0x1ed   :  { %v313_v31 = vadd.f32 %v421_v29, %v312_v30  ;;  %v465_v32 = vpop.f32.mrb[3].mxu0 }
 0x1ef   :  { %v316_v33 = vmax.f32 %v313_v31, 0.0 }
 0x1f1   :  { %475 = vmatmul.mubr.msk.f32.vlgmr.msra.gmra.mrb[2].mxu1 %vm242_vm3, %v316_v33 }
 0x2c4   :  { %v397_v35 = vpop.f32.mrb[2].mxu1 }
 0x2c5   :  { %v398_v36 = vadd.f32 %v423_v34, %v397_v35  ;;  %v476_v37 = vpop.f32.mrb[3].mxu1 }
 0x2c7   :  { %401 = vst.msk [vmem:[#allocation8] sm:$0xff] %vm74_vm1, %v398_v36 }
 0x2c8   :  { %576 = shalt.err (!%p573_p0)
}
 0x2c9   :  { %s577_s25 = scalar_lea.hbm %s755_s9, 128 }
 0x2ca   :  { %p578_p1 = scmp.ne.s32.totalorder %s755_s9, %s577_s25  ;;  %p581_p2 = scmp.lt.u32.totalorder %s577_s25, %s755_s9 }
 0x2cc   :  { %p583_p3 = pnand %p581_p2, %p578_p1 }
 0x2ce   :  { %586 = shalt.err (!%p583_p3)
}
 0x2cf   :  { %411 = dma.vmem_to_hbm [thread:$0]  %s409_s24, 128, %s755_s9, [#allocation4]  }
 0x2d0   :  { %591 = dma.done.wait [#allocation4], 128  }
 0x2d1   :  { %592 = vsyncadd [#allocation4], 4294967168 }
 0x2d2   :  { %415 = vsyncpa [#allocation3], 1 }
 0x2d3   :  { %416 = vsyncpa [#allocation6], 1 }
 0x2d4   :  { %417 = vsyncpa [#allocation4], 1 }

</bundles_post_ra>
